<compile_context>
chip_gen: v7x
topology: tpu7x:2x2x1
jax: 0.10.0
libtpu: 0.0.40
codegen_flags: <defaults>
</compile_context>

<pallas_src>
import functools

import jax
import jax.numpy as jnp
from jax.experimental import pallas as pl
from jax.experimental.pallas import tpu as pltpu


def _round_up(x: int, m: int) -> int:
    return ((x + m - 1) // m) * m


def _attention_kernel(h1_ref, h2_ref,
                      w1a_ref, w1b_ref, sc1_ref, sh1_ref,
                      w2_ref, sc2_ref, sh2_ref,
                      wo_ref, bo_ref,
                      out_ref, *, inv_tau):
    f32 = jnp.float32
    h1 = h1_ref[...]                                    # [TB, Dp] bf16
    h2 = h2_ref[...]                                    # [TB, Dp] bf16

    # ---- MLP layer 1: Linear(2D->2D) split over (h1, h2), bf16 MXU, f32 acc;
    #      folded eval-BN scale/shift; ReLU -----------------------------------
    z = (jnp.dot(h1, w1a_ref[...], preferred_element_type=f32) +
         jnp.dot(h2, w1b_ref[...], preferred_element_type=f32))     # [TB, Hp]
    z = jnp.maximum(z * sc1_ref[...] + sh1_ref[...], 0.0)

    # ---- MLP layer 2: Linear(2D->2D) bf16 MXU, f32 acc; eval-BN; ReLU -------
    z = jnp.dot(z.astype(jnp.bfloat16), w2_ref[...],
                preferred_element_type=f32)                          # [TB, Hp]
    z = jnp.maximum(z * sc2_ref[...] + sh2_ref[...], 0.0)

    # ---- Output layer: two logits via lane reductions (stays lane-dense);
    #      biases come from SMEM scalars --------------------------------------
    w_out = wo_ref[...]                                              # [2, Hp]
    a0 = jnp.sum(z * w_out[0:1, :], axis=-1, keepdims=True) + bo_ref[0]
    a1 = jnp.sum(z * w_out[1:2, :], axis=-1, keepdims=True) + bo_ref[1]

    # s = sigmoid(a)/tau ; softmax over the 2 gates collapses to a sigmoid of
    # the difference: e0 = sigmoid(s0 - s1), e1 = 1 - e0.
    s0 = inv_tau / (1.0 + jnp.exp(-a0))
    s1 = inv_tau / (1.0 + jnp.exp(-a1))
    g = 1.0 / (1.0 + jnp.exp(s1 - s0))                               # [TB, 1]

    # Re-read the streamed tiles at the blend point (short live ranges).
    h1f = h1_ref[...].astype(f32)
    h2f = h2_ref[...].astype(f32)
    out_ref[...] = (h2f + g * (h1f - h2f)).astype(out_ref.dtype)


def attention_layer_forward(h1, h2, params, *, tau=10.0, eps=1e-5, tile_b=512):
    """Pallas TPU implementation of AttentionLayer.forward (inference-mode BN).

    params (PyTorch layout):
      w1,b1,g1,be1,rm1,rv1  : Linear1 [2D,2D],[2D] and BatchNorm1 gamma/beta/mean/var
      w2,b2,g2,be2,rm2,rv2  : Linear2 + BatchNorm2
      wo,bo                 : output Linear [2,2D],[2]
    """
    B, D = h1.shape
    assert h2.shape == (B, D), "h1/h2 must have identical [B, latent_dim] shapes"
    H = 2 * D
    f32 = jnp.float32
    bf16 = jnp.bfloat16

    # ---- lane-dense padded feature dims -------------------------------------
    Dp = _round_up(D, 128)
    Hp = _round_up(H, 128)

    # ---- constant-parameter prep (constants only; no data pre-scaling) ------
    w1t = params["w1"].astype(f32).T                       # [H(in), H(out)]
    w1a = jnp.pad(w1t[:D, :], ((0, Dp - D), (0, Hp - H))).astype(bf16)   # acts on h1
    w1b = jnp.pad(w1t[D:, :], ((0, Dp - D), (0, Hp - H))).astype(bf16)   # acts on h2
    w2t = jnp.pad(params["w2"].astype(f32).T,
                  ((0, Hp - H), (0, Hp - H))).astype(bf16)

    s1 = params["g1"].astype(f32) / jnp.sqrt(params["rv1"].astype(f32) + eps)
    s2 = params["g2"].astype(f32) / jnp.sqrt(params["rv2"].astype(f32) + eps)
    sh1 = (params["b1"].astype(f32) - params["rm1"].astype(f32)) * s1 \
        + params["be1"].astype(f32)
    sh2 = (params["b2"].astype(f32) - params["rm2"].astype(f32)) * s2 \
        + params["be2"].astype(f32)
    pad_h = ((0, Hp - H),)
    sc1 = jnp.pad(s1, pad_h).reshape(1, Hp)
    sh1 = jnp.pad(sh1, pad_h).reshape(1, Hp)
    sc2 = jnp.pad(s2, pad_h).reshape(1, Hp)
    sh2 = jnp.pad(sh2, pad_h).reshape(1, Hp)
    wo = jnp.pad(params["wo"].astype(f32), ((0, 0), (0, Hp - H)))      # [2, Hp]
    bo = params["bo"].astype(f32)                                      # [2] -> SMEM

    # ---- batch tiling: sublane multiple + >=4 grid steps for v7x megacore ---
    SUB = 16                                   # bf16 sublane tile for streamed blocks
    tb = min(int(tile_b), _round_up(pl.cdiv(B, 4), SUB))
    tb = max(SUB, (tb // SUB) * SUB)
    b_pad = _round_up(B, tb)
    grid = (b_pad // tb,)

    def prep(h):
        if b_pad != B or Dp != D:
            h = jnp.pad(h, ((0, b_pad - B), (0, Dp - D)))
        return h.astype(bf16)

    h1p, h2p = prep(h1), prep(h2)

    # ---- explicit VMEM budget (double-buffered, conservative) ---------------
    w_bytes = (2 * Dp * Hp + Hp * Hp) * 2                 # bf16 weights
    row_bytes = 6 * Hp * 4                                # sc/sh rows + wo (f32)
    stream_bytes = tb * Dp * (2 + 2 + 4)                  # h1,h2 bf16 + out f32
    need = 2 * (w_bytes + row_bytes + stream_bytes)
    vmem_limit = int(min(max(need + (4 << 20), 32 << 20), 64 << 20))

    kernel = functools.partial(_attention_kernel, inv_tau=float(1.0 / tau))

    row_in_spec = pl.BlockSpec((tb, Dp), lambda i: (i, 0))
    row_out_spec = pl.BlockSpec((tb, Dp), lambda i: (i, 0))

    def const(shape):
        return pl.BlockSpec(shape, lambda i: (0, 0))      # VMEM-resident constants

    out = pl.pallas_call(
        kernel,
        out_shape=jax.ShapeDtypeStruct((b_pad, Dp), h1.dtype),
        grid=grid,
        in_specs=[
            row_in_spec, row_in_spec,            # h1, h2 (bf16 streamed)
            const((Dp, Hp)), const((Dp, Hp)),    # w1a, w1b (bf16)
            const((1, Hp)), const((1, Hp)),      # sc1, sh1 (f32)
            const((Hp, Hp)),                     # w2t (bf16)
            const((1, Hp)), const((1, Hp)),      # sc2, sh2 (f32)
            const((2, Hp)),                      # wo (f32)
            pl.BlockSpec(memory_space=pltpu.MemorySpace.SMEM),   # bo scalars
        ],
        out_specs=row_out_spec,
        compiler_params=pltpu.CompilerParams(
            dimension_semantics=("parallel",),
            vmem_limit_bytes=vmem_limit),
    )(h1p, h2p, w1a, w1b, sc1, sh1, w2t, sc2, sh2, wo, bo)
    return out[:B, :D]


def _reference(h1, h2, p, tau=10.0, eps=1e-5):
    """Plain-JAX reference mirroring the PyTorch forward (eval-mode BN)."""
    hp = jax.lax.Precision.HIGHEST
    h = jnp.concatenate([h1, h2], axis=1)
    z = jnp.dot(h, p["w1"].T, precision=hp) + p["b1"]
    z = (z - p["rm1"]) / jnp.sqrt(p["rv1"] + eps) * p["g1"] + p["be1"]
    z = jax.nn.relu(z)
    z = jnp.dot(z, p["w2"].T, precision=hp) + p["b2"]
    z = (z - p["rm2"]) / jnp.sqrt(p["rv2"] + eps) * p["g2"] + p["be2"]
    z = jax.nn.relu(z)
    act = jnp.dot(z, p["wo"].T, precision=hp) + p["bo"]
    act = jax.nn.sigmoid(act) / tau
    e = jax.nn.softmax(act, axis=1)
    return e[:, 0:1] * h1 + e[:, 1:2] * h2


def _snap_bf16(x):
    # Snap to the bf16 grid so the bf16-operand MXU path and the f32 reference
    # see identical products; only accumulation / activation rounding differs.
    return x.astype(jnp.bfloat16).astype(jnp.float32)


if __name__ == "__main__":
    key = jax.random.PRNGKey(0)
    B, D = 8, 32                      # batch=8, latent_dim=32  -> hidden = 64
    H = 2 * D
    ks = jax.random.split(key, 16)

    h1 = _snap_bf16(jax.random.normal(ks[0], (B, D), jnp.float32))
    h2 = _snap_bf16(jax.random.normal(ks[1], (B, D), jnp.float32))

    params = dict(
        w1=_snap_bf16(jax.random.normal(ks[2], (H, H), jnp.float32) * 0.1),
        b1=_snap_bf16(jax.random.normal(ks[3], (H,), jnp.float32) * 0.1),
        g1=jax.random.uniform(ks[4], (H,), jnp.float32, 0.5, 1.5),
        be1=jax.random.normal(ks[5], (H,), jnp.float32) * 0.1,
        rm1=jax.random.normal(ks[6], (H,), jnp.float32) * 0.1,
        rv1=jax.random.uniform(ks[7], (H,), jnp.float32, 0.5, 1.5),
        w2=_snap_bf16(jax.random.normal(ks[8], (H, H), jnp.float32) * 0.1),
        b2=_snap_bf16(jax.random.normal(ks[9], (H,), jnp.float32) * 0.1),
        g2=jax.random.uniform(ks[10], (H,), jnp.float32, 0.5, 1.5),
        be2=jax.random.normal(ks[11], (H,), jnp.float32) * 0.1,
        rm2=jax.random.normal(ks[12], (H,), jnp.float32) * 0.1,
        rv2=jax.random.uniform(ks[13], (H,), jnp.float32, 0.5, 1.5),
        wo=_snap_bf16(jax.random.normal(ks[14], (2, H), jnp.float32) * 0.1),
        bo=_snap_bf16(jax.random.normal(ks[15], (2,), jnp.float32) * 0.1),
    )

    out = attention_layer_forward(h1, h2, params, tau=10.0)
    out = jax.block_until_ready(out)

    ref = _reference(h1, h2, params, tau=10.0)
    assert out.shape == (B, D), out.shape
    assert bool(jnp.all(jnp.isfinite(out))), "non-finite output"
    # Tolerance covers MXU accumulation-order noise plus the bf16 rounding of
    # the layer-2 activations (gate path is heavily damped by sigmoid/tau).
    assert jnp.allclose(out, ref, atol=2e-3, rtol=2e-3), (
        "mismatch vs reference: max abs err = "
        f"{float(jnp.max(jnp.abs(out - ref)))}")

    print("KERNEL_OK")
</pallas_src>

<mosaic_0001>
module attributes {stable_mosaic.version = 11 : i64} {
  func.func @_attention_kernel(%arg0: i32, %arg1: memref<16x128xbf16, #tpu.memory_space<vmem>>, %arg2: memref<16x128xbf16, #tpu.memory_space<vmem>>, %arg3: memref<128x128xbf16, #tpu.memory_space<vmem>>, %arg4: memref<128x128xbf16, #tpu.memory_space<vmem>>, %arg5: memref<1x128xf32, #tpu.memory_space<vmem>>, %arg6: memref<1x128xf32, #tpu.memory_space<vmem>>, %arg7: memref<128x128xbf16, #tpu.memory_space<vmem>>, %arg8: memref<1x128xf32, #tpu.memory_space<vmem>>, %arg9: memref<1x128xf32, #tpu.memory_space<vmem>>, %arg10: memref<2x128xf32, #tpu.memory_space<vmem>>, %arg11: memref<2xf32, #tpu.memory_space<smem>>, %arg12: memref<16x128xf32, #tpu.memory_space<vmem>>) attributes {dimension_semantics = [#tpu.dimension_semantics<parallel>], iteration_bounds = array<i64: 1>, scalar_prefetch = 0 : i64, scratch_operands = 0 : i64, tpu.core_type = #tpu.core_type<tc>, window_params = [{transform_indices = @transform_0, window_bounds = array<i64: 16, 128>}, {transform_indices = @transform_1, window_bounds = array<i64: 16, 128>}, {pipeline_mode = #tpu.pipeline_mode<synchronous>, transform_indices = @transform_2, window_bounds = array<i64: 128, 128>}, {pipeline_mode = #tpu.pipeline_mode<synchronous>, transform_indices = @transform_3, window_bounds = array<i64: 128, 128>}, {pipeline_mode = #tpu.pipeline_mode<synchronous>, transform_indices = @transform_4, window_bounds = array<i64: 1, 128>}, {pipeline_mode = #tpu.pipeline_mode<synchronous>, transform_indices = @transform_5, window_bounds = array<i64: 1, 128>}, {pipeline_mode = #tpu.pipeline_mode<synchronous>, transform_indices = @transform_6, window_bounds = array<i64: 128, 128>}, {pipeline_mode = #tpu.pipeline_mode<synchronous>, transform_indices = @transform_7, window_bounds = array<i64: 1, 128>}, {pipeline_mode = #tpu.pipeline_mode<synchronous>, transform_indices = @transform_8, window_bounds = array<i64: 1, 128>}, {pipeline_mode = #tpu.pipeline_mode<synchronous>, transform_indices = @transform_9, window_bounds = array<i64: 2, 128>}, {transform_indices = @transform_10, window_bounds = array<i64: 2>}, {transform_indices = @transform_11, window_bounds = array<i64: 16, 128>}]} {
    %c0 = arith.constant 0 : index
    %c0_0 = arith.constant 0 : index
    %0 = vector.load %arg1[%c0, %c0_0] : memref<16x128xbf16, #tpu.memory_space<vmem>>, vector<16x128xbf16>
    %c0_1 = arith.constant 0 : index
    %c0_2 = arith.constant 0 : index
    %1 = vector.load %arg2[%c0_1, %c0_2] : memref<16x128xbf16, #tpu.memory_space<vmem>>, vector<16x128xbf16>
    %c0_3 = arith.constant 0 : index
    %c0_4 = arith.constant 0 : index
    %2 = vector.load %arg3[%c0_3, %c0_4] : memref<128x128xbf16, #tpu.memory_space<vmem>>, vector<128x128xbf16>
    %cst = arith.constant dense<0.000000e+00> : vector<16x128xf32>
    %3 = tpu.matmul %0, %2, %cst {dimension_numbers = #tpu.dot_dimension_numbers<[1], [0], [0], [1], [0, 0, 1, 1], [], []>} : vector<16x128xbf16>, vector<128x128xbf16>, vector<16x128xf32> -> vector<16x128xf32>
    %c0_5 = arith.constant 0 : index
    %c0_6 = arith.constant 0 : index
    %4 = vector.load %arg4[%c0_5, %c0_6] : memref<128x128xbf16, #tpu.memory_space<vmem>>, vector<128x128xbf16>
    %cst_7 = arith.constant dense<0.000000e+00> : vector<16x128xf32>
    %5 = tpu.matmul %1, %4, %cst_7 {dimension_numbers = #tpu.dot_dimension_numbers<[1], [0], [0], [1], [0, 0, 1, 1], [], []>} : vector<16x128xbf16>, vector<128x128xbf16>, vector<16x128xf32> -> vector<16x128xf32>
    %6 = arith.addf %3, %5 : vector<16x128xf32>
    %c0_8 = arith.constant 0 : index
    %c0_9 = arith.constant 0 : index
    %7 = vector.load %arg5[%c0_8, %c0_9] : memref<1x128xf32, #tpu.memory_space<vmem>>, vector<1x128xf32>
    %8 = vector.broadcast %7 : vector<1x128xf32> to vector<16x128xf32>
    %9 = arith.mulf %6, %8 : vector<16x128xf32>
    %c0_10 = arith.constant 0 : index
    %c0_11 = arith.constant 0 : index
    %10 = vector.load %arg6[%c0_10, %c0_11] : memref<1x128xf32, #tpu.memory_space<vmem>>, vector<1x128xf32>
    %11 = vector.broadcast %10 : vector<1x128xf32> to vector<16x128xf32>
    %12 = arith.addf %9, %11 : vector<16x128xf32>
    %cst_12 = arith.constant 0.000000e+00 : f32
    %13 = vector.broadcast %cst_12 : f32 to vector<16x128xf32>
    %14 = arith.maximumf %12, %13 : vector<16x128xf32>
    %15 = arith.truncf %14 : vector<16x128xf32> to vector<16x128xbf16>
    %c0_13 = arith.constant 0 : index
    %c0_14 = arith.constant 0 : index
    %16 = vector.load %arg7[%c0_13, %c0_14] : memref<128x128xbf16, #tpu.memory_space<vmem>>, vector<128x128xbf16>
    %cst_15 = arith.constant dense<0.000000e+00> : vector<16x128xf32>
    %17 = tpu.matmul %15, %16, %cst_15 {dimension_numbers = #tpu.dot_dimension_numbers<[1], [0], [0], [1], [0, 0, 1, 1], [], []>} : vector<16x128xbf16>, vector<128x128xbf16>, vector<16x128xf32> -> vector<16x128xf32>
    %c0_16 = arith.constant 0 : index
    %c0_17 = arith.constant 0 : index
    %18 = vector.load %arg8[%c0_16, %c0_17] : memref<1x128xf32, #tpu.memory_space<vmem>>, vector<1x128xf32>
    %19 = vector.broadcast %18 : vector<1x128xf32> to vector<16x128xf32>
    %20 = arith.mulf %17, %19 : vector<16x128xf32>
    %c0_18 = arith.constant 0 : index
    %c0_19 = arith.constant 0 : index
    %21 = vector.load %arg9[%c0_18, %c0_19] : memref<1x128xf32, #tpu.memory_space<vmem>>, vector<1x128xf32>
    %22 = vector.broadcast %21 : vector<1x128xf32> to vector<16x128xf32>
    %23 = arith.addf %20, %22 : vector<16x128xf32>
    %cst_20 = arith.constant 0.000000e+00 : f32
    %24 = vector.broadcast %cst_20 : f32 to vector<16x128xf32>
    %25 = arith.maximumf %23, %24 : vector<16x128xf32>
    %c0_21 = arith.constant 0 : index
    %c0_22 = arith.constant 0 : index
    %26 = vector.load %arg10[%c0_21, %c0_22] : memref<2x128xf32, #tpu.memory_space<vmem>>, vector<2x128xf32>
    %27 = vector.extract_strided_slice %26 {offsets = [0, 0], sizes = [1, 128], strides = [1, 1]} : vector<2x128xf32> to vector<1x128xf32>
    %28 = vector.broadcast %27 : vector<1x128xf32> to vector<16x128xf32>
    %29 = arith.mulf %25, %28 : vector<16x128xf32>
    %cst_23 = arith.constant dense<0.000000e+00> : vector<16xf32>
    %30 = vector.multi_reduction <add>, %29, %cst_23 [1] : vector<16x128xf32> to vector<16xf32>
    %31 = vector.shape_cast %30 : vector<16xf32> to vector<16x1xf32>
    %c0_24 = arith.constant 0 : index
    %32 = memref.load %arg11[%c0_24] : memref<2xf32, #tpu.memory_space<smem>>
    %33 = vector.broadcast %32 : f32 to vector<16x1xf32>
    %34 = arith.addf %31, %33 : vector<16x1xf32>
    %35 = vector.extract_strided_slice %26 {offsets = [1, 0], sizes = [1, 128], strides = [1, 1]} : vector<2x128xf32> to vector<1x128xf32>
    %36 = vector.broadcast %35 : vector<1x128xf32> to vector<16x128xf32>
    %37 = arith.mulf %25, %36 : vector<16x128xf32>
    %cst_25 = arith.constant dense<0.000000e+00> : vector<16xf32>
    %38 = vector.multi_reduction <add>, %37, %cst_25 [1] : vector<16x128xf32> to vector<16xf32>
    %39 = vector.shape_cast %38 : vector<16xf32> to vector<16x1xf32>
    %c1 = arith.constant 1 : index
    %40 = memref.load %arg11[%c1] : memref<2xf32, #tpu.memory_space<smem>>
    %41 = vector.broadcast %40 : f32 to vector<16x1xf32>
    %42 = arith.addf %39, %41 : vector<16x1xf32>
    %cst_26 = arith.constant 0.000000e+00 : f32
    %43 = vector.broadcast %cst_26 : f32 to vector<16x1xf32>
    %44 = arith.subf %43, %34 : vector<16x1xf32>
    %45 = math.exp %44 : vector<16x1xf32>
    %cst_27 = arith.constant 1.000000e+00 : f32
    %46 = vector.broadcast %cst_27 : f32 to vector<16x1xf32>
    %47 = arith.addf %46, %45 : vector<16x1xf32>
    %cst_28 = arith.constant 1.000000e-01 : f32
    %48 = vector.broadcast %cst_28 : f32 to vector<16x1xf32>
    %49 = arith.divf %48, %47 : vector<16x1xf32>
    %cst_29 = arith.constant 0.000000e+00 : f32
    %50 = vector.broadcast %cst_29 : f32 to vector<16x1xf32>
    %51 = arith.subf %50, %42 : vector<16x1xf32>
    %52 = math.exp %51 : vector<16x1xf32>
    %cst_30 = arith.constant 1.000000e+00 : f32
    %53 = vector.broadcast %cst_30 : f32 to vector<16x1xf32>
    %54 = arith.addf %53, %52 : vector<16x1xf32>
    %cst_31 = arith.constant 1.000000e-01 : f32
    %55 = vector.broadcast %cst_31 : f32 to vector<16x1xf32>
    %56 = arith.divf %55, %54 : vector<16x1xf32>
    %57 = arith.subf %56, %49 : vector<16x1xf32>
    %58 = math.exp %57 : vector<16x1xf32>
    %cst_32 = arith.constant 1.000000e+00 : f32
    %59 = vector.broadcast %cst_32 : f32 to vector<16x1xf32>
    %60 = arith.addf %59, %58 : vector<16x1xf32>
    %cst_33 = arith.constant 1.000000e+00 : f32
    %61 = vector.broadcast %cst_33 : f32 to vector<16x1xf32>
    %62 = arith.divf %61, %60 : vector<16x1xf32>
    %c0_34 = arith.constant 0 : index
    %c0_35 = arith.constant 0 : index
    %63 = vector.load %arg1[%c0_34, %c0_35] : memref<16x128xbf16, #tpu.memory_space<vmem>>, vector<16x128xbf16>
    %64 = arith.extf %63 : vector<16x128xbf16> to vector<16x128xf32>
    %c0_36 = arith.constant 0 : index
    %c0_37 = arith.constant 0 : index
    %65 = vector.load %arg2[%c0_36, %c0_37] : memref<16x128xbf16, #tpu.memory_space<vmem>>, vector<16x128xbf16>
    %66 = arith.extf %65 : vector<16x128xbf16> to vector<16x128xf32>
    %67 = arith.subf %64, %66 : vector<16x128xf32>
    %68 = vector.broadcast %62 : vector<16x1xf32> to vector<16x128xf32>
    %69 = arith.mulf %68, %67 : vector<16x128xf32>
    %70 = arith.addf %66, %69 : vector<16x128xf32>
    %c0_38 = arith.constant 0 : index
    %c0_39 = arith.constant 0 : index
    %71 = vector.load %arg12[%c0_38, %c0_39] : memref<16x128xf32, #tpu.memory_space<vmem>>, vector<16x128xf32>
    tpu.vector_store %arg12[%c0_38, %c0_39], %70 {strides = array<i32>} : memref<16x128xf32, #tpu.memory_space<vmem>>, vector<16x128xf32>,
    return
  }
  func.func @transform_0(%arg0: i32) -> (i32, i32) {
    %c0_i32 = arith.constant 0 : i32
    %c0_i32_0 = arith.constant 0 : i32
    return %arg0, %c0_i32 : i32, i32
  }
  func.func @transform_1(%arg0: i32) -> (i32, i32) {
    %c0_i32 = arith.constant 0 : i32
    %c0_i32_0 = arith.constant 0 : i32
    return %arg0, %c0_i32 : i32, i32
  }
  func.func @transform_2(%arg0: i32) -> (i32, i32) {
    %c0_i32 = arith.constant 0 : i32
    %c0_i32_0 = arith.constant 0 : i32
    %c0_i32_1 = arith.constant 0 : i32
    return %c0_i32, %c0_i32_0 : i32, i32
  }
  func.func @transform_3(%arg0: i32) -> (i32, i32) {
    %c0_i32 = arith.constant 0 : i32
    %c0_i32_0 = arith.constant 0 : i32
    %c0_i32_1 = arith.constant 0 : i32
    return %c0_i32, %c0_i32_0 : i32, i32
  }
  func.func @transform_4(%arg0: i32) -> (i32, i32) {
    %c0_i32 = arith.constant 0 : i32
    %c0_i32_0 = arith.constant 0 : i32
    %c0_i32_1 = arith.constant 0 : i32
    return %c0_i32, %c0_i32_0 : i32, i32
  }
  func.func @transform_5(%arg0: i32) -> (i32, i32) {
    %c0_i32 = arith.constant 0 : i32
    %c0_i32_0 = arith.constant 0 : i32
    %c0_i32_1 = arith.constant 0 : i32
    return %c0_i32, %c0_i32_0 : i32, i32
  }
  func.func @transform_6(%arg0: i32) -> (i32, i32) {
    %c0_i32 = arith.constant 0 : i32
    %c0_i32_0 = arith.constant 0 : i32
    %c0_i32_1 = arith.constant 0 : i32
    return %c0_i32, %c0_i32_0 : i32, i32
  }
  func.func @transform_7(%arg0: i32) -> (i32, i32) {
    %c0_i32 = arith.constant 0 : i32
    %c0_i32_0 = arith.constant 0 : i32
    %c0_i32_1 = arith.constant 0 : i32
    return %c0_i32, %c0_i32_0 : i32, i32
  }
  func.func @transform_8(%arg0: i32) -> (i32, i32) {
    %c0_i32 = arith.constant 0 : i32
    %c0_i32_0 = arith.constant 0 : i32
    %c0_i32_1 = arith.constant 0 : i32
    return %c0_i32, %c0_i32_0 : i32, i32
  }
  func.func @transform_9(%arg0: i32) -> (i32, i32) {
    %c0_i32 = arith.constant 0 : i32
    %c0_i32_0 = arith.constant 0 : i32
    %c0_i32_1 = arith.constant 0 : i32
    return %c0_i32, %c0_i32_0 : i32, i32
  }
  func.func @transform_10(%arg0: i32) -> i32 {
    %c0_i32 = arith.constant 0 : i32
    %c0_i32_0 = arith.constant 0 : i32
    return %c0_i32 : i32
  }
  func.func @transform_11(%arg0: i32) -> (i32, i32) {
    %c0_i32 = arith.constant 0 : i32
    %c0_i32_0 = arith.constant 0 : i32
    return %arg0, %c0_i32 : i32, i32
  }
}

</mosaic_0001>

<bundles_post_ra>
// kernel: tpu_custom_call.1
= control target key start
LH: loop header
LB: loop body
LE: loop exit
PB: predicated region body
PF: predicated region fallthrough
CT: control target
= control target key end

     0   :  { %16 = vsyncpa [#allocation3], 0  ;;  %s1177_s0 = inlined_call_operand.hbm [shape: bf16[16,128], index: 0, kind: input, shape index: {}]   ;;  %s1178_s1 = inlined_call_operand.hbm [shape: bf16[16,128], index: 1, kind: input, shape index: {}]   ;;  %s1179_s2 = inlined_call_operand.hbm [shape: bf16[128,128], index: 2, kind: input, shape index: {}]   ;;  %s1180_s3 = inlined_call_operand.hbm [shape: bf16[128,128], index: 3, kind: input, shape index: {}]   ;;  %s1181_s4 = inlined_call_operand.vmem [shape: f32[1,128], index: 4, kind: input, shape index: {}]   ;;  %s1182_s5 = inlined_call_operand.vmem [shape: f32[1,128], index: 5, kind: input, shape index: {}]   ;;  %s1183_s6 = inlined_call_operand.hbm [shape: bf16[128,128], index: 6, kind: input, shape index: {}]   ;;  %s1184_s7 = inlined_call_operand.vmem [shape: f32[1,128], index: 7, kind: input, shape index: {}]   ;;  %s1185_s8 = inlined_call_operand.vmem [shape: f32[1,128], index: 8, kind: input, shape index: {}]   ;;  %s1186_s9 = inlined_call_operand.vmem [shape: f32[2,128], index: 9, kind: input, shape index: {}]   ;;  %s1187_s10 = inlined_call_operand.vmem [shape: f32[2], index: 10, kind: input, shape index: {}]   ;;  %s1188_s11 = inlined_call_operand.hbm [shape: f32[16,128], index: 11, kind: output, shape index: {}]  }
   0x1   :  { %17 = vsyncpa [#allocation7], 0 }
   0x2   :  { %18 = vsyncpa [#allocation10], 0 }
   0x3   :  { %19 = vsyncpa [#allocation5], 0 }
   0x4   :  { %20 = vsyncpa [#allocation4], 0  ;;  %s931_s17 = smov [#allocation6]   ;;  %s932_s19 = smov [#allocation9]  }
   0x5   :  { %s38_s18 = sshll.u32 %s931_s17, 4  ;;  %s62_s20 = sshll.u32 %s932_s19, 4  ;;  %s39_s18 = int_to_ptr.vmem [resolvable:$true] %s38_s18  ;;  %s1004_s20 = int_to_ptr.vmem [resolvable:$true] %s62_s20 }
   0x6   :  { %s777_s23 = scalar_lea.hbm %s1178_s1, 128 }
   0x7   :  { %p778_p0 = scmp.ne.s32.totalorder %s1178_s1, %s777_s23  ;;  %p781_p1 = scmp.lt.u32.totalorder %s777_s23, %s1178_s1 }
   0x9   :  { %p783_p2 = pnand %p781_p1, %p778_p0 }
   0xb   :  { %786 = shalt.err (!%p783_p2)
}
   0xc   :  { %s787_s28 = scalar_lea.vmem %s39_s18, 128  ;;  %p792_p4 = scmp.lt.s32.totalorder %s39_s18, %s39_s18 }
   0xd   :  { %p788_p3 = scmp.ne.s32.totalorder %s39_s18, %s787_s28  ;;  %p793_p5 = scmp.lt.s32.totalorder %s787_s28, %s787_s28 }
   0xf   :  { %p794_p6 = por %p793_p5, %p792_p4 }
  0x11   :  { %p795_p7 = pnand %p794_p6, %p788_p3 }
  0x13   :  { %798 = shalt.err (!%p795_p7)
}
  0x14   :  { %s933_s29 = smov 64   ;;  %s934_s30 = smov 4  }
  0x15   :  { %44 = dma.hbm_to_vmem [thread:$0]  %s1178_s1, 128, %s39_s18, [#allocation7], %s933_s29, %s933_s29, %s934_s30  }
  0x16   :  { %s799_s16 = scalar_lea.hbm %s1180_s3, 1024 }
  0x17   :  { %p800_p8 = scmp.ne.s32.totalorder %s1180_s3, %s799_s16  ;;  %p803_p9 = scmp.lt.u32.totalorder %s799_s16, %s1180_s3 }
  0x19   :  { %p805_p10 = pnand %p803_p9, %p800_p8 }
  0x1b   :  { %808 = shalt.err (!%p805_p10)
}
  0x1c   :  { %s809_s23 = scalar_lea.vmem %s1004_s20, 1024  ;;  %p814_p12 = scmp.lt.s32.totalorder %s1004_s20, %s1004_s20 }
  0x1d   :  { %p810_p11 = scmp.ne.s32.totalorder %s1004_s20, %s809_s23  ;;  %p815_p13 = scmp.lt.s32.totalorder %s809_s23, %s809_s23 }
  0x1f   :  { %p816_p0 = por %p815_p13, %p814_p12 }
  0x21   :  { %p817_p1 = pnand %p816_p0, %p810_p11 }
  0x23   :  { %820 = shalt.err (!%p817_p1)
}
  0x24   :  { %68 = dma.hbm_to_vmem [thread:$0]  %s1180_s3, 1024, %s1004_s20, [#allocation10], %s933_s29, %s933_s29, %s934_s30  }
  0x25   :  { %s935_s24 = smov [#allocation2]   ;;  %s936_s26 = smov [#allocation8]  }
  0x26   :  { %s26_s25 = sshll.u32 %s935_s24, 4  ;;  %s50_s27 = sshll.u32 %s936_s26, 4  ;;  %s27_s25 = int_to_ptr.vmem [resolvable:$true] %s26_s25  ;;  %s1041_s27 = int_to_ptr.vmem [resolvable:$true] %s50_s27 }
  0x27   :  { %s821_s13 = scalar_lea.hbm %s1177_s0, 128 }
  0x28   :  { %p822_p2 = scmp.ne.s32.totalorder %s1177_s0, %s821_s13  ;;  %p825_p3 = scmp.lt.u32.totalorder %s821_s13, %s1177_s0 }
  0x2a   :  { %p827_p4 = pnand %p825_p3, %p822_p2 }
  0x2c   :  { %830 = shalt.err (!%p827_p4)
}
  0x2d   :  { %s831_s3 = scalar_lea.vmem %s27_s25, 128  ;;  %p836_p6 = scmp.lt.s32.totalorder %s27_s25, %s27_s25 }
  0x2e   :  { %p832_p5 = scmp.ne.s32.totalorder %s27_s25, %s831_s3  ;;  %p837_p7 = scmp.lt.s32.totalorder %s831_s3, %s831_s3 }
  0x30   :  { %p838_p8 = por %p837_p7, %p836_p6 }
  0x32   :  { %p839_p9 = pnand %p838_p8, %p832_p5 }
  0x34   :  { %842 = shalt.err (!%p839_p9)
}
  0x35   :  { %32 = dma.hbm_to_vmem [thread:$0]  %s1177_s0, 128, %s27_s25, [#allocation3], %s933_s29, %s933_s29, %s934_s30  }
  0x36   :  { %s843_s23 = scalar_lea.hbm %s1179_s2, 1024 }
  0x37   :  { %p844_p10 = scmp.ne.s32.totalorder %s1179_s2, %s843_s23  ;;  %p847_p11 = scmp.lt.u32.totalorder %s843_s23, %s1179_s2 }
  0x39   :  { %p849_p12 = pnand %p847_p11, %p844_p10 }
  0x3b   :  { %852 = shalt.err (!%p849_p12)
}
  0x3c   :  { %s853_s28 = scalar_lea.vmem %s1041_s27, 1024  ;;  %p858_p0 = scmp.lt.s32.totalorder %s1041_s27, %s1041_s27 }
  0x3d   :  { %p854_p13 = scmp.ne.s32.totalorder %s1041_s27, %s853_s28  ;;  %p859_p1 = scmp.lt.s32.totalorder %s853_s28, %s853_s28 }
  0x3f   :  { %p860_p2 = por %p859_p1, %p858_p0 }
  0x41   :  { %p861_p3 = pnand %p860_p2, %p854_p13 }
  0x43   :  { %864 = shalt.err (!%p861_p3)
}
  0x44   :  { %56 = dma.hbm_to_vmem [thread:$0]  %s1179_s2, 1024, %s1041_s27, [#allocation7], %s933_s29, %s933_s29, %s934_s30  }
  0x45   :  { %s97_s14 = sshll.u32 %s1187_s10, 4  ;;  %s937_s15 = smov [#allocation11]   ;;  %s98_s14 = int_to_ptr.vmem [resolvable:$true] %s97_s14 }
  0x46   :  { %s78_s16 = sshll.u32 %s937_s15, 4  ;;  %s865_s20 = scalar_lea.hbm %s1183_s6, 1024  ;;  %s79_s16 = int_to_ptr.vmem [resolvable:$true] %s78_s16 }
  0x47   :  { %p866_p4 = scmp.ne.s32.totalorder %s1183_s6, %s865_s20  ;;  %p869_p5 = scmp.lt.u32.totalorder %s865_s20, %s1183_s6 }
  0x49   :  { %p871_p6 = pnand %p869_p5, %p866_p4 }
  0x4b   :  { %874 = shalt.err (!%p871_p6)
}
  0x4c   :  { %s875_s2 = scalar_lea.vmem %s79_s16, 1024  ;;  %p880_p8 = scmp.lt.s32.totalorder %s79_s16, %s79_s16 }
  0x4d   :  { %p876_p7 = scmp.ne.s32.totalorder %s79_s16, %s875_s2  ;;  %p881_p9 = scmp.lt.s32.totalorder %s875_s2, %s875_s2 }
  0x4f   :  { %p882_p10 = por %p881_p9, %p880_p8 }
  0x51   :  { %p883_p11 = pnand %p882_p10, %p876_p7 }
  0x53   :  { %886 = shalt.err (!%p883_p11)
}
  0x54   :  { %84 = dma.hbm_to_vmem [thread:$0]  %s1183_s6, 1024, %s79_s16, [#allocation10], %s933_s29, %s933_s29, %s934_s30  }
  0x55   :  { %s887_s1 = scalar_lea.vmem %s98_s14, 16  ;;  %p892_p13 = scmp.lt.s32.totalorder %s98_s14, %s98_s14 }
  0x56   :  { %p888_p12 = scmp.ne.s32.totalorder %s98_s14, %s887_s1  ;;  %p893_p0 = scmp.lt.s32.totalorder %s887_s1, %s887_s1 }
  0x58   :  { %p894_p1 = por %p893_p0, %p892_p13 }
  0x5a   :  { %p895_p2 = pnand %p894_p1, %p888_p12 }
  0x5c   :  { %898 = shalt.err (!%p895_p2)
}
  0x5d   :  { %s938_s18 = smov [#allocation12]  }
  0x5e   :  { %100 = dma.vmem_to_smem %s98_s14, 16, %s938_s18, [#allocation5]  }
  0x5f   :  { %921 = dma.done.wait [#allocation3], 128  }
  0x60   :  { %922 = vsyncadd [#allocation3], 4294967168 }
  0x61   :  { %923 = dma.done.wait [#allocation7], 1152  }
  0x62   :  { %924 = vsyncadd [#allocation7], 4294966144 }
  0x63   :  { %925 = dma.done.wait [#allocation10], 2048  }
  0x64   :  { %926 = vsyncadd [#allocation10], 4294965248 }
  0x65   :  { %927 = dma.done.wait [#allocation5], 16  }
  0x66   :  { %928 = vsyncadd [#allocation5], 4294967280 }
  0x67   :  { %119 = sfence }
  0x68   :  { %v725_v0 = vld [vmem:[#allocation9] sm:$0xff]   ;;  %v939_v1 = vmov 0.0   ;;  %v726_v2 = vld [vmem:[#allocation9 + $0x8] sm:$0xff]   ;;  %vm940_vm0 = vmmov 0   ;;  %v727_v3 = vld [vmem:[#allocation9 + $0x10] sm:$0xff]   ;;  %v494_v46 = vlaneseq }
  0x69   :  { %648 = vmatprep.subr.bf16.mxu0 %v939_v1  ;;  %688 = vmatprep.subr.bf16.mxu1 %v939_v1  ;;  %v1104_v4 = vld [vmem:[#allocation2] sm:$0xff]   ;;  %v1106_v5 = vld [vmem:[#allocation6] sm:$0xff]   ;;  %v729_v13 = vld [vmem:[#allocation9 + $0x20] sm:$0xff]  }
  0x6a   :  { %649 = vmatpush3.bf16.msra.mxu0 %v725_v0  ;;  %664 = vmatprep.mubr.msk.bf16.mxu0 %vm940_vm0, %v939_v1  ;;  %v558_v6 = vunpack.c.l.bf16 %v1104_v4  ;;  %v559_v7 = vunpack.c.h.bf16 %v1104_v4  ;;  %v560_v8 = vunpack.c.l.bf16 %v1106_v5  ;;  %v728_v9 = vld [vmem:[#allocation9 + $0x18] sm:$0xff]   ;;  %v561_v10 = vunpack.c.h.bf16 %v1106_v5  ;;  %v743_v14 = vld [vmem:[#allocation11] sm:$0xff]   ;;  %v730_v15 = vld [vmem:[#allocation9 + $0x28] sm:$0xff]  }
  0x6b   :  { %650 = vmatprep.subr.bf16.mxu0 %v939_v1  ;;  %704 = vmatprep.mubr.msk.bf16.mxu1 %vm940_vm0, %v939_v1  ;;  %v744_v16 = vld [vmem:[#allocation11 + $0x8] sm:$0xff]   ;;  %v731_v17 = vld [vmem:[#allocation9 + $0x30] sm:$0xff]   ;;  %v732_v19 = vld [vmem:[#allocation9 + $0x38] sm:$0xff]   ;;  %v495_v47 = vshrl.u32 %v494_v46, 7 }
  0x6c   :  { %v1115_v11 = vsub.f32 %v558_v6, %v560_v8  ;;  %v1119_v12 = vsub.f32 %v559_v7, %v561_v10  ;;  %689 = vmatpush3.bf16.msra.mxu1 %v743_v14  ;;  %v745_v18 = vld [vmem:[#allocation11 + $0x10] sm:$0xff]   ;;  %v746_v20 = vld [vmem:[#allocation11 + $0x18] sm:$0xff]   ;;  %v734_v21 = vld [vmem:[#allocation8] sm:$0xff]  }
  0x6d   :  { %690 = vmatprep.subr.bf16.mxu1 %v939_v1  ;;  %v747_v22 = vld [vmem:[#allocation11 + $0x20] sm:$0xff]   ;;  %v735_v23 = vld [vmem:[#allocation8 + $0x8] sm:$0xff]   ;;  %v736_v24 = vld [vmem:[#allocation8 + $0x10] sm:$0xff]   ;;  %v510_v49 = vsub.s32 1, %v495_v47  ;;  %v496_v50 = vsub.s32 0, %v495_v47 }
  0x6e   :  { %651 = vmatpush3.bf16.msra.mxu0 %v726_v2  ;;  %v737_v25 = vld [vmem:[#allocation8 + $0x18] sm:$0xff]   ;;  %v738_v26 = vld [vmem:[#allocation8 + $0x20] sm:$0xff]   ;;  %v739_v27 = vld [vmem:[#allocation8 + $0x28] sm:$0xff]  }
  0x6f   :  { %652 = vmatprep.subr.bf16.mxu0 %v939_v1  ;;  %v740_v28 = vld [vmem:[#allocation8 + $0x30] sm:$0xff]   ;;  %v741_v29 = vld [vmem:[#allocation8 + $0x38] sm:$0xff]   ;;  %v748_v30 = vld [vmem:[#allocation11 + $0x28] sm:$0xff]  }
  0x70   :  { %691 = vmatpush3.bf16.msra.mxu1 %v744_v16  ;;  %v749_v31 = vld [vmem:[#allocation11 + $0x30] sm:$0xff]   ;;  %v750_v32 = vld [vmem:[#allocation11 + $0x38] sm:$0xff]  }
  0x71   :  { %692 = vmatprep.subr.bf16.mxu1 %v939_v1  ;;  %v608_v33 = vld [vmem:[%s1181_s4] ss:$0 sm:$0xff] }
  0x72   :  { %653 = vmatpush3.bf16.msra.mxu0 %v727_v3  ;;  %v609_v35 = vld [vmem:[%s1182_s5] ss:$0 sm:$0xff] }
  0x73   :  { %654 = vmatprep.subr.bf16.mxu0 %v939_v1  ;;  %v618_v48 = vld [vmem:[%s1184_s7] ss:$0 sm:$0xff]  ;;  %s620_s7 = sld [smem:[#allocation12 + $0x1]] }
  0x74   :  { %693 = vmatpush3.bf16.msra.mxu1 %v745_v18  ;;  %v619_v52 = vld [vmem:[%s1185_s8] ss:$0 sm:$0xff]  ;;  %s504_s8 = sld [smem:[#allocation12]] }
  0x75   :  { %694 = vmatprep.subr.bf16.mxu1 %v939_v1  ;;  %v493_v53 = vld [vmem:[%s1186_s9] sm:$0x3]  ;;  %s941_s9 = smov [#allocation13]  }
  0x76   :  { %655 = vmatpush3.bf16.msra.mxu0 %v728_v9  ;;  %v511_v60 = vrot.slane %v493_v53, %v510_v49  ;;  %v497_v61 = vrot.slane %v493_v53, %v496_v50  ;;  %s575_s12 = sshll.u32 %s941_s9, 4  ;;  %s576_s12 = int_to_ptr.vmem [resolvable:$true] %s575_s12 }
  0x77   :  { %656 = vmatprep.subr.bf16.mxu0 %v939_v1  ;;  %s899_s13 = scalar_lea.vmem %s576_s12, 256  ;;  %p904_p4 = scmp.lt.s32.totalorder %s576_s12, %s576_s12 }
  0x78   :  { %695 = vmatpush3.bf16.msra.mxu1 %v746_v20  ;;  %p900_p3 = scmp.ne.s32.totalorder %s576_s12, %s899_s13  ;;  %p905_p5 = scmp.lt.s32.totalorder %s899_s13, %s899_s13 }
  0x79   :  { %696 = vmatprep.subr.bf16.mxu1 %v939_v1  ;;  %v519_v6 = vstv %s620_s7 }
  0x7a   :  { %657 = vmatpush3.bf16.msra.mxu0 %v729_v13  ;;  %v505_v7 = vstv %s504_s8  ;;  %p906_p6 = por %p905_p5, %p904_p4 }
  0x7b   :  { %658 = vmatprep.subr.bf16.mxu0 %v939_v1 }
  0x7c   :  { %697 = vmatpush3.bf16.msra.mxu1 %v747_v22  ;;  %p907_p7 = pnand %p906_p6, %p900_p3 }
  0x7d   :  { %698 = vmatprep.subr.bf16.mxu1 %v939_v1 }
  0x7e   :  { %659 = vmatpush3.bf16.msra.mxu0 %v730_v15 }
  0x7f   :  { %660 = vmatprep.subr.bf16.mxu0 %v939_v1 }
  0x80   :  { %699 = vmatpush3.bf16.msra.mxu1 %v748_v30 }
  0x81   :  { %700 = vmatprep.subr.bf16.mxu1 %v939_v1 }
  0x82   :  { %661 = vmatpush3.bf16.msra.mxu0 %v731_v17 }
  0x83   :  { %662 = vmatprep.subr.bf16.mxu0 %v939_v1 }
  0x84   :  { %701 = vmatpush3.bf16.msra.mxu1 %v749_v31 }
  0x85   :  { %702 = vmatprep.subr.bf16.mxu1 %v939_v1 }
  0x86   :  { %663 = vmatpush3.bf16.msra.mxu0 %v732_v19 }
  0x87   :  { %668 = vmatprep.subr.bf16.mxu0 %v939_v1 }
  0x88   :  { %703 = vmatpush3.bf16.msra.mxu1 %v750_v32 }
  0x89   :  { %665 = vmatmul.mubr.bf16.vlgmr.msra.gmra.mrb[0].mxu0 %v1106_v5 }
  0x8a   :  { %669 = vmatpush3.bf16.msra.mxu0 %v734_v21  ;;  %684 = vmatprep.mubr.msk.bf16.mxu0 %vm940_vm0, %v939_v1 }
  0x8b   :  { %670 = vmatprep.subr.bf16.mxu0 %v939_v1 }
  0x8e   :  { %671 = vmatpush3.bf16.msra.mxu0 %v735_v23 }
  0x8f   :  { %672 = vmatprep.subr.bf16.mxu0 %v939_v1 }
  0x92   :  { %673 = vmatpush3.bf16.msra.mxu0 %v736_v24 }
  0x93   :  { %674 = vmatprep.subr.bf16.mxu0 %v939_v1 }
  0x96   :  { %675 = vmatpush3.bf16.msra.mxu0 %v737_v25 }
  0x97   :  { %676 = vmatprep.subr.bf16.mxu0 %v939_v1 }
  0x9a   :  { %677 = vmatpush3.bf16.msra.mxu0 %v738_v26 }
  0x9b   :  { %678 = vmatprep.subr.bf16.mxu0 %v939_v1 }
  0x9e   :  { %679 = vmatpush3.bf16.msra.mxu0 %v739_v27 }
  0x9f   :  { %680 = vmatprep.subr.bf16.mxu0 %v939_v1 }
  0xa2   :  { %681 = vmatpush3.bf16.msra.mxu0 %v740_v28 }
  0xa3   :  { %682 = vmatprep.subr.bf16.mxu0 %v939_v1 }
  0xa6   :  { %683 = vmatpush3.bf16.msra.mxu0 %v741_v29 }
  0xa9   :  { %685 = vmatmul.mubr.bf16.vlgmr.msra.gmra.mrb[0].mxu0 %v1104_v4 }
 0x17c   :  { %v340_v34 = vpop.f32.mrb[0].mxu0 }
 0x17d   :  { %v354_v36 = vmul.f32 %v608_v33, %v340_v34  ;;  %v686_v37 = vpop.f32.mrb[1].mxu0 }
 0x17e   :  { %v343_v38 = vpop.f32.mrb[2].mxu0 }
 0x17f   :  { %v363_v39 = vadd.f32 %v609_v35, %v354_v36  ;;  %v355_v40 = vmul.f32 %v608_v33, %v343_v38  ;;  %v687_v41 = vpop.f32.mrb[3].mxu0 }
 0x181   :  { %v364_v42 = vadd.f32 %v609_v35, %v355_v40  ;;  %v365_v43 = vmax.f32 %v363_v39, 0.0 }
 0x183   :  { %v366_v44 = vmax.f32 %v364_v42, 0.0 }
 0x185   :  { %v367_v45 = vpack.c.bf16 %v366_v44, %v365_v43 }
 0x187   :  { %705 = vmatmul.mubr.bf16.vlgmr.msra.gmra.mrb[0].mxu1 %v367_v45 }
 0x25a   :  { %v466_v51 = vpop.f32.mrb[0].mxu1 }
 0x25b   :  { %v480_v54 = vmul.f32 %v618_v48, %v466_v51  ;;  %v706_v55 = vpop.f32.mrb[1].mxu1 }
 0x25c   :  { %v469_v56 = vpop.f32.mrb[2].mxu1 }
 0x25d   :  { %v481_v57 = vmul.f32 %v618_v48, %v469_v56  ;;  %v707_v58 = vpop.f32.mrb[3].mxu1  ;;  %v489_v59 = vadd.f32 %v619_v52, %v480_v54 }
 0x25f   :  { %v490_v62 = vadd.f32 %v619_v52, %v481_v57  ;;  %v491_v63 = vmax.f32 %v489_v59, 0.0 }
 0x261   :  { %v492_v0 = vmax.f32 %v490_v62, 0.0  ;;  %v512_v1 = vmul.f32 %v511_v60, %v491_v63  ;;  %v498_v2 = vmul.f32 %v497_v61, %v491_v63 }
 0x263   :  { %514 = vadd.xlane.f32.xlu1 %v512_v1  ;;  %500 = vadd.xlane.f32.xlu0 %v498_v2  ;;  %v513_v3 = vmul.f32 %v511_v60, %v492_v0  ;;  %v499_v4 = vmul.f32 %v497_v61, %v492_v0 }
 0x267   :  { %516 = vadd.xlane.f32.xlu1 %v513_v3  ;;  %502 = vadd.xlane.f32.xlu0 %v499_v4 }
 0x2f0   :  { %v515_v9 = vpop.xlane.xlu1 %514  ;;  %v501_v13 = vpop.xlane.xlu0 %500 }
 0x2f1   :  { %v520_v14 = vadd.f32 %v519_v6, %v515_v9  ;;  %v506_v15 = vadd.f32 %v505_v7, %v501_v13 }
 0x2f3   :  { %v534_v16 = vsub.f32 0.0, %v520_v14  ;;  %v522_v17 = vsub.f32 0.0, %v506_v15 }
 0x2f4   :  { %v517_v18 = vpop.xlane.xlu1 %516  ;;  %v503_v19 = vpop.xlane.xlu0 %502 }
 0x2f5   :  { %v536_v20 = vmul.f32 1.442695, %v534_v16  ;;  %v524_v21 = vmul.f32 1.442695, %v522_v17  ;;  %v521_v22 = vadd.f32 %v519_v6, %v517_v18  ;;  %v507_v23 = vadd.f32 %v505_v7, %v503_v19 }
 0x2f7   :  { %753 = vpow2.f32 %v536_v20  ;;  %v535_v24 = vsub.f32 0.0, %v521_v22  ;;  %v523_v25 = vsub.f32 0.0, %v507_v23 }
 0x2f8   :  { %755 = vpow2.f32 %v524_v21 }
 0x2f9   :  { %v538_v26 = vmul.f32 1.442695, %v535_v24  ;;  %v526_v27 = vmul.f32 1.442695, %v523_v25 }
 0x2fb   :  { %757 = vpow2.f32 %v538_v26 }
 0x2fc   :  { %759 = vpow2.f32 %v526_v27 }
 0x301   :  { %v754_v28 = vpop.eup %753 }
 0x302   :  { %v756_v29 = vpop.eup %755  ;;  %v540_v30 = vadd.f32 1.0, %v754_v28 }
 0x303   :  { %v528_v31 = vadd.f32 1.0, %v756_v29 }
 0x304   :  { %761 = vrcp.f32 %v540_v30 }
 0x305   :  { %v758_v32 = vpop.eup %757  ;;  %763 = vrcp.f32 %v528_v31 }
 0x306   :  { %v760_v33 = vpop.eup %759  ;;  %v541_v34 = vadd.f32 1.0, %v758_v32 }
 0x307   :  { %v529_v35 = vadd.f32 1.0, %v760_v33 }
 0x308   :  { %765 = vrcp.f32 %v541_v34 }
 0x309   :  { %767 = vrcp.f32 %v529_v35 }
 0x30e   :  { %v762_v36 = vpop.eup %761 }
 0x30f   :  { %v764_v37 = vpop.eup %763  ;;  %v543_v38 = vmul.f32 0.1, %v762_v36 }
 0x310   :  { %v531_v39 = vmul.f32 0.1, %v764_v37 }
 0x312   :  { %v766_v40 = vpop.eup %765  ;;  %v546_v41 = vsub.f32 %v543_v38, %v531_v39 }
 0x313   :  { %v768_v42 = vpop.eup %767  ;;  %v545_v43 = vmul.f32 0.1, %v766_v40 }
 0x314   :  { %v548_v44 = vmul.f32 1.442695, %v546_v41  ;;  %v533_v45 = vmul.f32 0.1, %v768_v42 }
 0x316   :  { %769 = vpow2.f32 %v548_v44  ;;  %v547_v46 = vsub.f32 %v545_v43, %v533_v45 }
 0x318   :  { %v550_v47 = vmul.f32 1.442695, %v547_v46 }
 0x31a   :  { %771 = vpow2.f32 %v550_v47 }
 0x320   :  { %v770_v48 = vpop.eup %769 }
 0x321   :  { %v552_v49 = vadd.f32 1.0, %v770_v48 }
 0x323   :  { %773 = vrcp.f32 %v552_v49 }
 0x324   :  { %v772_v50 = vpop.eup %771 }
 0x325   :  { %v553_v51 = vadd.f32 1.0, %v772_v50 }
 0x327   :  { %775 = vrcp.f32 %v553_v51 }
 0x32d   :  { %v774_v52 = vpop.eup %773 }
 0x32e   :  { %v564_v53 = vmul.f32 %v774_v52, %v1115_v11 }
 0x330   :  { %v566_v54 = vadd.f32 %v564_v53, %v560_v8 }
 0x331   :  { %v776_v55 = vpop.eup %775 }
 0x332   :  { %v565_v56 = vmul.f32 %v776_v55, %v1119_v12  ;;  %568 = vst [vmem:[#allocation13] sm:$0xff] %v566_v54 }
 0x334   :  { %v567_v57 = vadd.f32 %v565_v56, %v561_v10 }
 0x336   :  { %569 = vst [vmem:[#allocation13 + $0x8] sm:$0xff] %v567_v57 }
 0x337   :  { %910 = shalt.err (!%p907_p7)
}
 0x338   :  { %s911_s16 = scalar_lea.hbm %s1188_s11, 256 }
 0x339   :  { %p912_p8 = scmp.ne.s32.totalorder %s1188_s11, %s911_s16  ;;  %p915_p9 = scmp.lt.u32.totalorder %s911_s16, %s1188_s11 }
 0x33b   :  { %p917_p10 = pnand %p915_p9, %p912_p8 }
 0x33d   :  { %920 = shalt.err (!%p917_p10)
}
 0x33e   :  { %s942_s21 = smov 128   ;;  %s943_s22 = smov 8  }
 0x33f   :  { %581 = dma.vmem_to_hbm [thread:$0]  %s576_s12, 256, %s1188_s11, [#allocation4], %s942_s21, %s942_s21, %s943_s22  }
 0x340   :  { %929 = dma.done.wait [#allocation4], 256  }
 0x341   :  { %930 = vsyncadd [#allocation4], 4294967040 }
 0x342   :  { %585 = vsyncpa [#allocation3], 1 }
 0x343   :  { %586 = vsyncpa [#allocation7], 1 }
 0x344   :  { %587 = vsyncpa [#allocation10], 1 }
 0x345   :  { %588 = vsyncpa [#allocation4], 1 }
 0x346   :  { %589 = vsyncpa [#allocation5], 1 }

</bundles_post_ra>
